<compile_context>
chip_gen: v5e
topology: v5e:2x2
jax: 0.10.0
libtpu: 0.0.40
codegen_flags: <defaults>
</compile_context>

<pallas_src>
import jax
import jax.numpy as jnp
import numpy as np
from jax import lax
from jax.experimental import pallas as pl
from jax.experimental.pallas import tpu as pltpu


def _round_up(a, m):
    return (a + m - 1) // m * m


def make_relu_layer_kernel(n_valid, n_total):
    """n_valid: real out_features; n_total: lane-padded out_features."""
    inv_n = 1.0 / float(n_valid)
    needs_mask = int(n_total) != int(n_valid)

    def kernel(x_ref, w_ref, b_ref, o_ref, acc_ref):
        # x_ref: (tm, tk)  w_ref: (tk, Np)  b_ref: (1, Np)
        # o_ref: (tm, Np)  acc_ref: (tm, Np) f32 scratch
        k = pl.program_id(1)

        @pl.when(k == 0)
        def _():
            acc_ref[...] = jnp.zeros_like(acc_ref)

        # MXU matmul, f32 accumulation across the K grid axis.
        acc_ref[...] += jnp.dot(x_ref[...], w_ref[...],
                                preferred_element_type=jnp.float32)

        @pl.when(k == pl.num_programs(1) - 1)
        def _():
            # Linear bias + ReLU, then normalize over the feature axis.
            r = jnp.maximum(acc_ref[...] + b_ref[...], 0.0)
            # Padded columns have zero weight & bias -> relu gives exactly 0,
            # so the row sum over the padded slab equals the true sum.
            mean = jnp.sum(r, axis=-1, keepdims=True) * inv_n
            c = r - mean
            if needs_mask:
                # Mask padded columns out of the variance (they are -mean).
                col = lax.broadcasted_iota(jnp.int32, r.shape, 1)
                c = jnp.where(col < n_valid, c, 0.0)
            # Centered (two-pass) variance: no E[x^2]-E[x]^2 cancellation.
            var = jnp.sum(c * c, axis=-1, keepdims=True) * inv_n
            # eps added to std (not var) to match torch.std(...) + 1e-5.
            inv_std = 1.0 / (jnp.sqrt(var) + 1e-5)   # (tm,1) exact divide: cheap
            o_ref[...] = (c * inv_std).astype(o_ref.dtype)

    return kernel


def relu_layer_forward(x, w_t, b, *, out_dtype=None, max_tm=1024):
    """x: (..., K); w_t: (K, N) (transpose of torch weight); b: (N,)."""
    lead = x.shape[:-1]
    K = x.shape[-1]
    assert w_t.shape[0] == K
    N = w_t.shape[1]
    if out_dtype is None:
        out_dtype = x.dtype

    x2 = x.reshape(-1, K)
    M = x2.shape[0]

    # --- per-generation VMEM budget -----------------------------------------
    # v5e/v6e: 128 MiB per core, v7x: 64 MiB per core.
    try:
        vmem_cap = int(pltpu.get_tpu_info().vmem_capacity_bytes)
    except Exception:
        vmem_cap = 64 * 1024 * 1024            # conservative fallback (= v7x)
    budget = int(0.60 * vmem_cap)              # tile-sizing budget
    vmem_limit = int(min(0.75 * vmem_cap, budget + (32 << 20)))

    x_bytes = jnp.dtype(x2.dtype).itemsize
    w_bytes = jnp.dtype(w_t.dtype).itemsize
    o_bytes = jnp.dtype(out_dtype).itemsize

    # --- lane-dense output slab ---------------------------------------------
    N_pad = _round_up(N, 128)

    # --- K tiling: resident weight if it fits, else stream (tk, N) slices ----
    if K * N_pad * w_bytes <= int(0.40 * budget):
        tk, n_k, w_buffers = K, 1, 1           # resident, single-buffered
    else:
        tk = (int(0.40 * budget) // (2 * N_pad * w_bytes)) // 128 * 128
        tk = max(128, min(tk, _round_up(K, 128)))
        n_k = pl.cdiv(K, tk)
        w_buffers = 2                          # streamed -> double-buffered
    K_pad = n_k * tk

    # --- minimal padding (no full pad-to-tm copy) -----------------------------
    M_pad = _round_up(M, 8)                    # sublane multiple only
    if M_pad != M or K_pad != K:
        x2 = jnp.pad(x2, ((0, M_pad - M), (0, K_pad - K)))
    w_p = w_t
    if K_pad != K or N_pad != N:
        w_p = jnp.pad(w_t, ((0, K_pad - K), (0, N_pad - N)))
    b_p = b.astype(jnp.float32).reshape(1, N)
    if N_pad != N:
        b_p = jnp.pad(b_p, ((0, 0), (0, N_pad - N)))

    # --- row-tile sizing (honest VMEM estimate) -------------------------------
    fixed = w_buffers * tk * N_pad * w_bytes + N_pad * 4   # weight bufs + bias
    per_row = (2 * tk * x_bytes            # x tile, double-buffered
               + 2 * N_pad * o_bytes       # out tile, double-buffered
               + N_pad * 4                 # f32 accumulator scratch
               + 2 * N_pad * 4)            # f32 epilogue temporaries (r, c)
    tm = max(8, (budget - fixed) // per_row)
    tm = min(tm, max_tm, M_pad)
    if M_pad >= 512:                       # keep >=2 row tiles for v7x's 2 TCs
        tm = min(tm, _round_up(pl.cdiv(M_pad, 2), 256))
    if tm >= 256:                          # MXU (256x256) / packing friendly
        tm = tm // 256 * 256
    else:
        tm = max(8, tm // 8 * 8)

    grid = (pl.cdiv(M_pad, tm), n_k)       # reduction (K) axis innermost

    def build_call(use_buffered_hint):
        resident = {"pipeline_mode": pl.Buffered(1)} if use_buffered_hint else {}
        w_kwargs = resident if n_k == 1 else {}
        return pl.pallas_call(
            make_relu_layer_kernel(N, N_pad),
            out_shape=jax.ShapeDtypeStruct((M_pad, N_pad), out_dtype),
            grid_spec=pltpu.PrefetchScalarGridSpec(
                num_scalar_prefetch=0,
                grid=grid,
                in_specs=[
                    pl.BlockSpec((tm, tk), lambda i, k: (i, k)),          # x
                    pl.BlockSpec((tk, N_pad), lambda i, k: (k, 0), **w_kwargs),
                    pl.BlockSpec((1, N_pad), lambda i, k: (0, 0), **resident),
                ],
                out_specs=pl.BlockSpec((tm, N_pad), lambda i, k: (i, 0)),
                scratch_shapes=[pltpu.VMEM((tm, N_pad), jnp.float32)],
            ),
            compiler_params=pltpu.CompilerParams(
                dimension_semantics=("parallel", "arbitrary"),
                vmem_limit_bytes=vmem_limit,
            ),
        )(x2, w_p, b_p)

    try:
        out = build_call(True)
    except Exception:
        # Fallback without the single-buffer hint (identical numerics).
        out = build_call(False)

    out = out[:M, :N]
    return out.reshape(*lead, N)


def init_relu_layer_params(key, in_features, out_features, sigma=1.0, bias=True):
    """Deterministic init matching ReluLayer.init_weights (normal std=sigma / 1e-6)."""
    kw, kb = jax.random.split(key)
    # torch nn.Linear weight is (out, in); we keep its transpose (in, out).
    w_t = sigma * jax.random.normal(kw, (in_features, out_features), jnp.float32)
    if bias:
        b = 1e-6 * jax.random.normal(kb, (out_features,), jnp.float32)
    else:
        b = jnp.zeros((out_features,), jnp.float32)
    return w_t, b


if __name__ == "__main__":
    key = jax.random.PRNGKey(0)
    k_x, k_p = jax.random.split(key)

    batch, seq, in_features, out_features = 2, 8, 32, 64

    # Snap inputs/weights to the bf16 grid so the correctness check is
    # insensitive to how many bf16 passes the MXU uses for the f32 matmul
    # (bf16*bf16 products are exact in f32). The kernel still runs in f32.
    def bf16_grid(v):
        return v.astype(jnp.bfloat16).astype(jnp.float32)

    x = bf16_grid(jax.random.normal(k_x, (batch, seq, in_features), jnp.float32))
    w_t, b = init_relu_layer_params(k_p, in_features, out_features, sigma=1.0)
    w_t, b = bf16_grid(w_t), bf16_grid(b)

    out = jax.block_until_ready(relu_layer_forward(x, w_t, b))

    # Reference in float64 NumPy (exactly the PyTorch forward).
    x64 = np.asarray(x, np.float64)
    w64 = np.asarray(w_t, np.float64)
    b64 = np.asarray(b, np.float64)
    y = np.maximum(x64 @ w64 + b64, 0.0)
    mean = y.mean(axis=-1, keepdims=True)
    std = np.sqrt(((y - mean) ** 2).mean(axis=-1, keepdims=True))
    ref = (y - mean) / (std + 1e-5)

    assert out.shape == (batch, seq, out_features)
    err = float(np.max(np.abs(np.asarray(out, np.float64) - ref)))
    assert err < 1e-3, err

    print("KERNEL_OK")
</pallas_src>

<mosaic_0001>
module attributes {stable_mosaic.version = 11 : i64} {
  func.func @kernel(%arg0: i32, %arg1: i32, %arg2: memref<16x32xf32, #tpu.memory_space<vmem>>, %arg3: memref<32x128xf32, #tpu.memory_space<vmem>>, %arg4: memref<1x128xf32, #tpu.memory_space<vmem>>, %arg5: memref<16x128xf32, #tpu.memory_space<vmem>>, %arg6: memref<16x128xf32, #tpu.memory_space<vmem>>) attributes {dimension_semantics = [#tpu.dimension_semantics<parallel>, #tpu.dimension_semantics<arbitrary>], iteration_bounds = array<i64: 1, 1>, scalar_prefetch = 0 : i64, scratch_operands = 1 : i64, tpu.core_type = #tpu.core_type<tc>, window_params = [{transform_indices = @transform_0, window_bounds = array<i64: 16, 32>}, {pipeline_mode = #tpu.pipeline_mode<synchronous>, transform_indices = @transform_1, window_bounds = array<i64: 32, 128>}, {pipeline_mode = #tpu.pipeline_mode<synchronous>, transform_indices = @transform_2, window_bounds = array<i64: 1, 128>}, {transform_indices = @transform_3, window_bounds = array<i64: 16, 128>}]} {
    %c0_i32 = arith.constant 0 : i32
    %0 = arith.cmpi eq, %arg1, %c0_i32 : i32
    %1 = arith.extui %0 : i1 to i32
    %c0_i32_0 = arith.constant 0 : i32
    %2 = arith.cmpi ne, %1, %c0_i32_0 : i32
    scf.if %2 {
      %cst_10 = arith.constant 0.000000e+00 : f32
      %12 = vector.broadcast %cst_10 : f32 to vector<16x128xf32>
      %c0_11 = arith.constant 0 : index
      %c0_12 = arith.constant 0 : index
      %13 = vector.load %arg6[%c0_11, %c0_12] : memref<16x128xf32, #tpu.memory_space<vmem>>, vector<16x128xf32>
      tpu.vector_store %arg6[%c0_11, %c0_12], %12 {strides = array<i32>} : memref<16x128xf32, #tpu.memory_space<vmem>>, vector<16x128xf32>,
    } else {
    }
    %c0 = arith.constant 0 : index
    %c0_1 = arith.constant 0 : index
    %3 = vector.load %arg6[%c0, %c0_1] : memref<16x128xf32, #tpu.memory_space<vmem>>, vector<16x128xf32>
    %c0_2 = arith.constant 0 : index
    %c0_3 = arith.constant 0 : index
    %4 = vector.load %arg2[%c0_2, %c0_3] : memref<16x32xf32, #tpu.memory_space<vmem>>, vector<16x32xf32>
    %c0_4 = arith.constant 0 : index
    %c0_5 = arith.constant 0 : index
    %5 = vector.load %arg3[%c0_4, %c0_5] : memref<32x128xf32, #tpu.memory_space<vmem>>, vector<32x128xf32>
    %cst = arith.constant dense<0.000000e+00> : vector<16x128xf32>
    %6 = tpu.matmul %4, %5, %cst {dimension_numbers = #tpu.dot_dimension_numbers<[1], [0], [0], [1], [0, 0, 1, 1], [], []>} : vector<16x32xf32>, vector<32x128xf32>, vector<16x128xf32> -> vector<16x128xf32>
    %7 = arith.addf %3, %6 : vector<16x128xf32>
    %c0_6 = arith.constant 0 : index
    %c0_7 = arith.constant 0 : index
    %8 = vector.load %arg6[%c0_6, %c0_7] : memref<16x128xf32, #tpu.memory_space<vmem>>, vector<16x128xf32>
    tpu.vector_store %arg6[%c0_6, %c0_7], %7 {strides = array<i32>} : memref<16x128xf32, #tpu.memory_space<vmem>>, vector<16x128xf32>,
    %c0_i32_8 = arith.constant 0 : i32
    %9 = arith.cmpi eq, %arg1, %c0_i32_8 : i32
    %10 = arith.extui %9 : i1 to i32
    %c0_i32_9 = arith.constant 0 : i32
    %11 = arith.cmpi ne, %10, %c0_i32_9 : i32
    scf.if %11 {
      %c0_10 = arith.constant 0 : index
      %c0_11 = arith.constant 0 : index
      %12 = vector.load %arg6[%c0_10, %c0_11] : memref<16x128xf32, #tpu.memory_space<vmem>>, vector<16x128xf32>
      %c0_12 = arith.constant 0 : index
      %c0_13 = arith.constant 0 : index
      %13 = vector.load %arg4[%c0_12, %c0_13] : memref<1x128xf32, #tpu.memory_space<vmem>>, vector<1x128xf32>
      %14 = vector.broadcast %13 : vector<1x128xf32> to vector<16x128xf32>
      %15 = arith.addf %12, %14 : vector<16x128xf32>
      %cst_14 = arith.constant 0.000000e+00 : f32
      %16 = vector.broadcast %cst_14 : f32 to vector<16x128xf32>
      %17 = arith.maximumf %15, %16 : vector<16x128xf32>
      %cst_15 = arith.constant dense<0.000000e+00> : vector<16xf32>
      %18 = vector.multi_reduction <add>, %17, %cst_15 [1] : vector<16x128xf32> to vector<16xf32>
      %19 = vector.shape_cast %18 : vector<16xf32> to vector<16x1xf32>
      %cst_16 = arith.constant 1.562500e-02 : f32
      %20 = vector.broadcast %cst_16 : f32 to vector<16x1xf32>
      %21 = arith.mulf %19, %20 : vector<16x1xf32>
      %22 = vector.broadcast %21 : vector<16x1xf32> to vector<16x128xf32>
      %23 = arith.subf %17, %22 : vector<16x128xf32>
      %24 = tpu.iota {dimensions = array<i32: 1>} : vector<16x128xi32>
      %c64_i32 = arith.constant 64 : i32
      %25 = vector.broadcast %c64_i32 : i32 to vector<16x128xi32>
      %26 = arith.cmpi slt, %24, %25 : vector<16x128xi32>
      %cst_17 = arith.constant 0.000000e+00 : f32
      %27 = vector.broadcast %cst_17 : f32 to vector<16x128xf32>
      %28 = arith.select %26, %23, %27 : vector<16x128xi1>, vector<16x128xf32>
      %29 = arith.mulf %28, %28 : vector<16x128xf32>
      %cst_18 = arith.constant dense<0.000000e+00> : vector<16xf32>
      %30 = vector.multi_reduction <add>, %29, %cst_18 [1] : vector<16x128xf32> to vector<16xf32>
      %31 = vector.shape_cast %30 : vector<16xf32> to vector<16x1xf32>
      %cst_19 = arith.constant 1.562500e-02 : f32
      %32 = vector.broadcast %cst_19 : f32 to vector<16x1xf32>
      %33 = arith.mulf %31, %32 : vector<16x1xf32>
      %34 = math.sqrt %33 : vector<16x1xf32>
      %cst_20 = arith.constant 9.99999974E-6 : f32
      %35 = vector.broadcast %cst_20 : f32 to vector<16x1xf32>
      %36 = arith.addf %34, %35 : vector<16x1xf32>
      %cst_21 = arith.constant 1.000000e+00 : f32
      %37 = vector.broadcast %cst_21 : f32 to vector<16x1xf32>
      %38 = arith.divf %37, %36 : vector<16x1xf32>
      %39 = vector.broadcast %38 : vector<16x1xf32> to vector<16x128xf32>
      %40 = arith.mulf %28, %39 : vector<16x128xf32>
      %c0_22 = arith.constant 0 : index
      %c0_23 = arith.constant 0 : index
      %41 = vector.load %arg5[%c0_22, %c0_23] : memref<16x128xf32, #tpu.memory_space<vmem>>, vector<16x128xf32>
      tpu.vector_store %arg5[%c0_22, %c0_23], %40 {strides = array<i32>} : memref<16x128xf32, #tpu.memory_space<vmem>>, vector<16x128xf32>,
    } else {
    }
    return
  }
  func.func @transform_0(%arg0: i32, %arg1: i32) -> (i32, i32) {
    %c0_i32 = arith.constant 0 : i32
    return %arg0, %arg1 : i32, i32
  }
  func.func @transform_1(%arg0: i32, %arg1: i32) -> (i32, i32) {
    %c0_i32 = arith.constant 0 : i32
    %c0_i32_0 = arith.constant 0 : i32
    return %arg1, %c0_i32 : i32, i32
  }
  func.func @transform_2(%arg0: i32, %arg1: i32) -> (i32, i32) {
    %c0_i32 = arith.constant 0 : i32
    %c0_i32_0 = arith.constant 0 : i32
    %c0_i32_1 = arith.constant 0 : i32
    return %c0_i32, %c0_i32_0 : i32, i32
  }
  func.func @transform_3(%arg0: i32, %arg1: i32) -> (i32, i32) {
    %c0_i32 = arith.constant 0 : i32
    %c0_i32_0 = arith.constant 0 : i32
    return %arg0, %c0_i32 : i32, i32
  }
}

module attributes {stable_mosaic.version = 11 : i64} {
  func.func @kernel(%arg0: i32, %arg1: i32, %arg2: memref<16x32xf32, #tpu.memory_space<vmem>>, %arg3: memref<32x128xf32, #tpu.memory_space<vmem>>, %arg4: memref<1x128xf32, #tpu.memory_space<vmem>>, %arg5: memref<16x128xf32, #tpu.memory_space<vmem>>, %arg6: memref<16x128xf32, #tpu.memory_space<vmem>>) attributes {dimension_semantics = [#tpu.dimension_semantics<parallel>, #tpu.dimension_semantics<arbitrary>], iteration_bounds = array<i64: 1, 1>, scalar_prefetch = 0 : i64, scratch_operands = 1 : i64, tpu.core_type = #tpu.core_type<tc>, window_params = [{transform_indices = @transform_0, window_bounds = array<i64: 16, 32>}, {transform_indices = @transform_1, window_bounds = array<i64: 32, 128>}, {pipeline_mode = #tpu.pipeline_mode<synchronous>, transform_indices = @transform_2, window_bounds = array<i64: 1, 128>}, {transform_indices = @transform_3, window_bounds = array<i64: 16, 128>}]} {
    %c0_i32 = arith.constant 0 : i32
    %0 = arith.cmpi eq, %arg1, %c0_i32 : i32
    %1 = arith.extui %0 : i1 to i32
    %c0_i32_0 = arith.constant 0 : i32
    %2 = arith.cmpi ne, %1, %c0_i32_0 : i32
    scf.if %2 {
      %cst_10 = arith.constant 0.000000e+00 : f32
      %12 = vector.broadcast %cst_10 : f32 to vector<16x128xf32>
      %c0_11 = arith.constant 0 : index
      %c0_12 = arith.constant 0 : index
      %13 = vector.load %arg6[%c0_11, %c0_12] : memref<16x128xf32, #tpu.memory_space<vmem>>, vector<16x128xf32>
      tpu.vector_store %arg6[%c0_11, %c0_12], %12 {strides = array<i32>} : memref<16x128xf32, #tpu.memory_space<vmem>>, vector<16x128xf32>,
    } else {
    }
    %c0 = arith.constant 0 : index
    %c0_1 = arith.constant 0 : index
    %3 = vector.load %arg6[%c0, %c0_1] : memref<16x128xf32, #tpu.memory_space<vmem>>, vector<16x128xf32>
    %c0_2 = arith.constant 0 : index
    %c0_3 = arith.constant 0 : index
    %4 = vector.load %arg2[%c0_2, %c0_3] : memref<16x32xf32, #tpu.memory_space<vmem>>, vector<16x32xf32>
    %c0_4 = arith.constant 0 : index
    %c0_5 = arith.constant 0 : index
    %5 = vector.load %arg3[%c0_4, %c0_5] : memref<32x128xf32, #tpu.memory_space<vmem>>, vector<32x128xf32>
    %cst = arith.constant dense<0.000000e+00> : vector<16x128xf32>
    %6 = tpu.matmul %4, %5, %cst {dimension_numbers = #tpu.dot_dimension_numbers<[1], [0], [0], [1], [0, 0, 1, 1], [], []>} : vector<16x32xf32>, vector<32x128xf32>, vector<16x128xf32> -> vector<16x128xf32>
    %7 = arith.addf %3, %6 : vector<16x128xf32>
    %c0_6 = arith.constant 0 : index
    %c0_7 = arith.constant 0 : index
    %8 = vector.load %arg6[%c0_6, %c0_7] : memref<16x128xf32, #tpu.memory_space<vmem>>, vector<16x128xf32>
    tpu.vector_store %arg6[%c0_6, %c0_7], %7 {strides = array<i32>} : memref<16x128xf32, #tpu.memory_space<vmem>>, vector<16x128xf32>,
    %c0_i32_8 = arith.constant 0 : i32
    %9 = arith.cmpi eq, %arg1, %c0_i32_8 : i32
    %10 = arith.extui %9 : i1 to i32
    %c0_i32_9 = arith.constant 0 : i32
    %11 = arith.cmpi ne, %10, %c0_i32_9 : i32
    scf.if %11 {
      %c0_10 = arith.constant 0 : index
      %c0_11 = arith.constant 0 : index
      %12 = vector.load %arg6[%c0_10, %c0_11] : memref<16x128xf32, #tpu.memory_space<vmem>>, vector<16x128xf32>
      %c0_12 = arith.constant 0 : index
      %c0_13 = arith.constant 0 : index
      %13 = vector.load %arg4[%c0_12, %c0_13] : memref<1x128xf32, #tpu.memory_space<vmem>>, vector<1x128xf32>
      %14 = vector.broadcast %13 : vector<1x128xf32> to vector<16x128xf32>
      %15 = arith.addf %12, %14 : vector<16x128xf32>
      %cst_14 = arith.constant 0.000000e+00 : f32
      %16 = vector.broadcast %cst_14 : f32 to vector<16x128xf32>
      %17 = arith.maximumf %15, %16 : vector<16x128xf32>
      %cst_15 = arith.constant dense<0.000000e+00> : vector<16xf32>
      %18 = vector.multi_reduction <add>, %17, %cst_15 [1] : vector<16x128xf32> to vector<16xf32>
      %19 = vector.shape_cast %18 : vector<16xf32> to vector<16x1xf32>
      %cst_16 = arith.constant 1.562500e-02 : f32
      %20 = vector.broadcast %cst_16 : f32 to vector<16x1xf32>
      %21 = arith.mulf %19, %20 : vector<16x1xf32>
      %22 = vector.broadcast %21 : vector<16x1xf32> to vector<16x128xf32>
      %23 = arith.subf %17, %22 : vector<16x128xf32>
      %24 = tpu.iota {dimensions = array<i32: 1>} : vector<16x128xi32>
      %c64_i32 = arith.constant 64 : i32
      %25 = vector.broadcast %c64_i32 : i32 to vector<16x128xi32>
      %26 = arith.cmpi slt, %24, %25 : vector<16x128xi32>
      %cst_17 = arith.constant 0.000000e+00 : f32
      %27 = vector.broadcast %cst_17 : f32 to vector<16x128xf32>
      %28 = arith.select %26, %23, %27 : vector<16x128xi1>, vector<16x128xf32>
      %29 = arith.mulf %28, %28 : vector<16x128xf32>
      %cst_18 = arith.constant dense<0.000000e+00> : vector<16xf32>
      %30 = vector.multi_reduction <add>, %29, %cst_18 [1] : vector<16x128xf32> to vector<16xf32>
      %31 = vector.shape_cast %30 : vector<16xf32> to vector<16x1xf32>
      %cst_19 = arith.constant 1.562500e-02 : f32
      %32 = vector.broadcast %cst_19 : f32 to vector<16x1xf32>
      %33 = arith.mulf %31, %32 : vector<16x1xf32>
      %34 = math.sqrt %33 : vector<16x1xf32>
      %cst_20 = arith.constant 9.99999974E-6 : f32
      %35 = vector.broadcast %cst_20 : f32 to vector<16x1xf32>
      %36 = arith.addf %34, %35 : vector<16x1xf32>
      %cst_21 = arith.constant 1.000000e+00 : f32
      %37 = vector.broadcast %cst_21 : f32 to vector<16x1xf32>
      %38 = arith.divf %37, %36 : vector<16x1xf32>
      %39 = vector.broadcast %38 : vector<16x1xf32> to vector<16x128xf32>
      %40 = arith.mulf %28, %39 : vector<16x128xf32>
      %c0_22 = arith.constant 0 : index
      %c0_23 = arith.constant 0 : index
      %41 = vector.load %arg5[%c0_22, %c0_23] : memref<16x128xf32, #tpu.memory_space<vmem>>, vector<16x128xf32>
      tpu.vector_store %arg5[%c0_22, %c0_23], %40 {strides = array<i32>} : memref<16x128xf32, #tpu.memory_space<vmem>>, vector<16x128xf32>,
    } else {
    }
    return
  }
  func.func @transform_0(%arg0: i32, %arg1: i32) -> (i32, i32) {
    %c0_i32 = arith.constant 0 : i32
    return %arg0, %arg1 : i32, i32
  }
  func.func @transform_1(%arg0: i32, %arg1: i32) -> (i32, i32) {
    %c0_i32 = arith.constant 0 : i32
    %c0_i32_0 = arith.constant 0 : i32
    return %arg1, %c0_i32 : i32, i32
  }
  func.func @transform_2(%arg0: i32, %arg1: i32) -> (i32, i32) {
    %c0_i32 = arith.constant 0 : i32
    %c0_i32_0 = arith.constant 0 : i32
    %c0_i32_1 = arith.constant 0 : i32
    return %c0_i32, %c0_i32_0 : i32, i32
  }
  func.func @transform_3(%arg0: i32, %arg1: i32) -> (i32, i32) {
    %c0_i32 = arith.constant 0 : i32
    %c0_i32_0 = arith.constant 0 : i32
    return %arg0, %c0_i32 : i32, i32
  }
}

</mosaic_0001>

<bundles_post_ra>
// kernel: tpu_custom_call.1
= control target key start
LH: loop header
LB: loop body
LE: loop exit
PB: predicated region body
PF: predicated region fallthrough
CT: control target
= control target key end

     0   :  { %8 = vsyncpa [#allocation4], 0  ;;  %s358_s0 = inlined_call_operand.hbm [shape: f32[16,32], index: 0, kind: input, shape index: {}]   ;;  %s359_s1 = inlined_call_operand.hbm [shape: f32[32,128], index: 1, kind: input, shape index: {}]   ;;  %s360_s2 = inlined_call_operand.vmem [shape: f32[1,128], index: 2, kind: input, shape index: {}]   ;;  %s361_s3 = inlined_call_operand.hbm [shape: f32[16,128], index: 3, kind: output, shape index: {}]  }
   0x1   :  { %9 = vsyncpa [#allocation7], 0 }
   0x2   :  { %10 = vsyncpa [#allocation5], 0  ;;  %s15_s14 = sshll.u32 %s358_s0, 4  ;;  %s307_s15 = smov [#allocation3]   ;;  %s16_s14 = int_to_ptr.hbm [resolvable:$true] %s15_s14 }
   0x3   :  { %s17_s16 = sshll.u32 %s307_s15, 4  ;;  %s28_s19 = sshll.u32 %s359_s1, 4  ;;  %s18_s16 = int_to_ptr.vmem [resolvable:$true] %s17_s16  ;;  %s29_s19 = int_to_ptr.hbm [resolvable:$true] %s28_s19 }
   0x4   :  { %s308_s20 = smov 128   ;;  %s309_s21 = smov 8  }
   0x5   :  { %23 = dma.hbm_to_vmem [thread:$0]  %s16_s14, 256, %s18_s16, [#allocation4], %s308_s20, %s308_s20, %s309_s21  }
   0x6   :  { %s310_s22 = smov [#allocation6]  }
   0x7   :  { %s30_s23 = sshll.u32 %s310_s22, 4  ;;  %s31_s23 = int_to_ptr.vmem [resolvable:$true] %s30_s23 }
   0x8   :  { %36 = dma.hbm_to_vmem [thread:$0]  %s29_s19, 512, %s31_s23, [#allocation7], %s308_s20, %s308_s20, %s309_s21  }
   0x9   :  { %301 = dma.done.wait [#allocation4], 256  }
   0xa   :  { %302 = vsyncadd [#allocation4], 4294967040 }
   0xb   :  { %303 = dma.done.wait [#allocation7], 512  }
   0xc   :  { %304 = vsyncadd [#allocation7], 4294966784  ;;  %v60_v0 = vld [vmem:[#allocation6 + $0x18] sm:$0xff]  ;;  %v59_v1 = vld [vmem:[#allocation6 + $0x10] sm:$0xff]  ;;  %vm61_vm0 = vcmask 261120   ;;  %v116_v13 = vlaneseq  ;;  %s195_s27 = sshll.u32 %s361_s3, 4  ;;  %s196_s27 = int_to_ptr.hbm [resolvable:$true] %s195_s27 }
   0xd   :  { %80 = vmatpush.msra.mxu0 %v60_v0  ;;  %211 = vmatpush.msra.mxu1 %v60_v0  ;;  %v58_v2 = vld [vmem:[#allocation6 + $0x8] sm:$0xff]  ;;  %v57_v3 = vld [vmem:[#allocation6] sm:$0xff]  ;;  %v55_v4 = vld [vmem:[#allocation3] sm:$0xff] }
   0xe   :  { %v56_v5 = vld [vmem:[#allocation3 + $0x8] sm:$0xff]  ;;  %v220_v6 = vld [vmem:[%s360_s2] ss:$0 sm:$0xff]  ;;  %v117_v14 = vand.u32 127, %v116_v13  ;;  %s311_s2 = smov [#allocation8]  }
   0xf   :  { %81 = vmatpush.msra.mxu0 %v59_v1  ;;  %212 = vmatpush.msra.mxu1 %v59_v1  ;;  %s193_s24 = sshll.u32 %s311_s2, 4  ;;  %s194_s24 = int_to_ptr.vmem [resolvable:$true] %s193_s24 }
  0x10   :  { %vm118_vm1 = vcmp.lt.s32.totalorder %v117_v14, 64 }
  0x11   :  { %82 = vmatpush.msra.mxu0 %v58_v2  ;;  %213 = vmatpush.msra.mxu1 %v58_v2 }
  0x13   :  { %83 = vmatpush.msra.mxu0 %v57_v3  ;;  %214 = vmatpush.msra.mxu1 %v57_v3 }
  0x14   :  { %209 = vmatmul.msk.f32.vlgmr.msra.gmra.mxu0 %vm61_vm0, %v55_v4  ;;  %210 = vmatmul.msk.f32.vlgmr.msra.gmra.mxu1 %vm61_vm0, %v56_v5 }
  0x91   :  { %v85_v7 = vpop.f32.mrf.mxu0  ;;  %v88_v9 = vpop.f32.mrf.mxu1 }
  0x92   :  { %v104_v8 = vadd.f32 %v220_v6, %v85_v7  ;;  %v105_v11 = vadd.f32 %v220_v6, %v88_v9 }
  0x94   :  { %v106_v10 = vmax.f32 %v104_v8, 0.0  ;;  %v107_v12 = vmax.f32 %v105_v11, 0.0 }
  0x96   :  { %108 = vadd.xlane.f32.xlu0 %v106_v10 }
  0x9e   :  { %110 = vadd.xlane.f32.xlu0 %v107_v12 }
 0x109   :  { %v109_v15 = vpop.xlane.xlu0 %108 }
 0x10a   :  { %v112_v16 = vmul.f32 0.015625, %v109_v15 }
 0x10c   :  { %v114_v17 = vsub.f32 %v106_v10, %v112_v16 }
 0x10e   :  { %v119_v18 = vsel %vm118_vm1, %v114_v17, 0.0 }
 0x10f   :  { %v121_v19 = vmul.f32 %v119_v18, %v119_v18 }
 0x111   :  { %123 = vadd.xlane.f32.xlu1 %v121_v19  ;;  %v111_v20 = vpop.xlane.xlu0 %110 }
 0x112   :  { %v113_v21 = vmul.f32 0.015625, %v111_v20 }
 0x114   :  { %v115_v22 = vsub.f32 %v107_v12, %v113_v21 }
 0x116   :  { %v347_v23 = vsel %vm118_vm1, %v115_v22, 0.0 }
 0x117   :  { %v122_v24 = vmul.f32 %v347_v23, %v347_v23 }
 0x119   :  { %125 = vadd.xlane.f32.xlu1 %v122_v24 }
 0x184   :  { %v124_v25 = vpop.xlane.xlu1 %123 }
 0x185   :  { %v127_v26 = vmul.f32 0.015625, %v124_v25 }
 0x187   :  { %221 = vrsqrt.f32 %v127_v26  ;;  %vm136_vm2 = vcmp.eq.f32.partialorder %v127_v26, inf  ;;  %v139_v39 = vand.u32 2147483648, %v127_v26  ;;  %vm138_vm3 = vcmp.eq.f32.partialorder %v127_v26, 0.0 }
 0x18c   :  { %v126_v27 = vpop.xlane.xlu1 %125 }
 0x18d   :  { %v222_v28 = vpop.eup %221  ;;  %v128_v29 = vmul.f32 0.015625, %v126_v27 }
 0x18e   :  { %v130_v30 = vmul.f32 %v222_v28, %v127_v26 }
 0x18f   :  { %223 = vrsqrt.f32 %v128_v29  ;;  %vm148_vm4 = vcmp.eq.f32.partialorder %v128_v29, inf  ;;  %v151_v47 = vand.u32 2147483648, %v128_v29  ;;  %vm150_vm5 = vcmp.eq.f32.partialorder %v128_v29, 0.0 }
 0x190   :  { %v131_v31 = vmul.f32 %v222_v28, %v130_v30 }
 0x192   :  { %v132_v32 = vmul.f32 0.5, %v131_v31 }
 0x194   :  { %v133_v33 = vsub.f32 1.5, %v132_v32 }
 0x195   :  { %v224_v34 = vpop.eup %223 }
 0x196   :  { %v134_v35 = vmul.f32 %v222_v28, %v133_v33  ;;  %v142_v36 = vmul.f32 %v224_v34, %v128_v29 }
 0x198   :  { %v135_v37 = vmul.f32 %v134_v35, %v127_v26  ;;  %v143_v38 = vmul.f32 %v224_v34, %v142_v36 }
 0x19a   :  { %v137_v40 = vsel %vm136_vm2, %v127_v26, %v135_v37  ;;  %v144_v41 = vmul.f32 0.5, %v143_v38 }
 0x19b   :  { %v140_v42 = vsel %vm138_vm3, %v139_v39, %v137_v40 }
 0x19c   :  { %v145_v43 = vsub.f32 1.5, %v144_v41  ;;  %v153_v44 = vadd.f32 1e-05, %v140_v42 }
 0x19e   :  { %v146_v45 = vmul.f32 %v224_v34, %v145_v43  ;;  %225 = vrcp.f32 %v153_v44  ;;  %v166_v54 = vand.u32 2147483648, %v153_v44  ;;  %v164_v56 = vand.u32 2147483647, %v153_v44 }
 0x19f   :  { %vm160_vm7 = vweird.f32 %v153_v44 }
 0x1a0   :  { %v147_v46 = vmul.f32 %v146_v45, %v128_v29  ;;  %v167_v59 = vor.u32 1.1754944e-38, %v166_v54  ;;  %vm165_vm9 = vcmp.eq.f32.partialorder %v164_v56, 8.507059e+37 }
 0x1a2   :  { %v149_v48 = vsel %vm148_vm4, %v128_v29, %v147_v46 }
 0x1a3   :  { %v152_v49 = vsel %vm150_vm5, %v151_v47, %v149_v48 }
 0x1a4   :  { %v226_v50 = vpop.eup %225  ;;  %v154_v51 = vadd.f32 1e-05, %v152_v49 }
 0x1a5   :  { %v156_v52 = vmul.f32 %v226_v50, %v153_v44  ;;  %vm161_vm6 = vweird.f32 %v226_v50 }
 0x1a6   :  { %227 = vrcp.f32 %v154_v51  ;;  %vm162_vm8 = vmor %vm160_vm7, %vm161_vm6  ;;  %v181_v1 = vand.u32 2147483648, %v154_v51  ;;  %v179_v3 = vand.u32 2147483647, %v154_v51  ;;  %vm175_vm11 = vweird.f32 %v154_v51 }
 0x1a7   :  { %v157_v53 = vsub.f32 1.0, %v156_v52 }
 0x1a8   :  { %v182_v5 = vor.u32 1.1754944e-38, %v181_v1  ;;  %vm180_vm13 = vcmp.eq.f32.partialorder %v179_v3, 8.507059e+37 }
 0x1a9   :  { %v158_v55 = vmul.f32 %v226_v50, %v157_v53 }
 0x1ab   :  { %v159_v57 = vadd.f32 %v226_v50, %v158_v55 }
 0x1ac   :  { %v228_v58 = vpop.eup %227 }
 0x1ad   :  { %v163_v60 = vsel %vm162_vm8, %v226_v50, %v159_v57  ;;  %v171_v61 = vmul.f32 %v228_v58, %v154_v51  ;;  %vm176_vm10 = vweird.f32 %v228_v58 }
 0x1ae   :  { %v168_v62 = vsel %vm165_vm9, %v167_v59, %v163_v60  ;;  %vm177_vm12 = vmor %vm175_vm11, %vm176_vm10 }
 0x1af   :  { %v172_v63 = vsub.f32 1.0, %v171_v61  ;;  %v185_v0 = vmul.f32 %v168_v62, %v119_v18 }
 0x1b1   :  { %v173_v2 = vmul.f32 %v228_v58, %v172_v63  ;;  %187 = vst [vmem:[#allocation8] sm:$0xff] %v185_v0 }
 0x1b3   :  { %v174_v4 = vadd.f32 %v228_v58, %v173_v2 }
 0x1b5   :  { %v178_v6 = vsel %vm177_vm12, %v228_v58, %v174_v4 }
 0x1b6   :  { %v183_v7 = vsel %vm180_vm13, %v182_v5, %v178_v6 }
 0x1b7   :  { %v186_v8 = vmul.f32 %v183_v7, %v347_v23 }
 0x1b9   :  { %188 = vst [vmem:[#allocation8 + $0x8] sm:$0xff] %v186_v8 }
 0x1ba   :  { %201 = dma.vmem_to_hbm [thread:$0]  %s194_s24, 256, %s196_s27, [#allocation5], %s308_s20, %s308_s20, %s309_s21  }
 0x1bb   :  { %305 = dma.done.wait [#allocation5], 256  }
 0x1bc   :  { %306 = vsyncadd [#allocation5], 4294967040 }
 0x1bd   :  { %206 = vsyncpa [#allocation4], 1 }
 0x1be   :  { %207 = vsyncpa [#allocation7], 1 }
 0x1bf   :  { %208 = vsyncpa [#allocation5], 1 }

// kernel: tpu_custom_call.1
= control target key start
LH: loop header
LB: loop body
LE: loop exit
PB: predicated region body
PF: predicated region fallthrough
CT: control target
= control target key end

     0   :  { %8 = vsyncpa [#allocation4], 0  ;;  %s358_s0 = inlined_call_operand.hbm [shape: f32[16,32], index: 0, kind: input, shape index: {}]   ;;  %s359_s1 = inlined_call_operand.hbm [shape: f32[32,128], index: 1, kind: input, shape index: {}]   ;;  %s360_s2 = inlined_call_operand.vmem [shape: f32[1,128], index: 2, kind: input, shape index: {}]   ;;  %s361_s3 = inlined_call_operand.hbm [shape: f32[16,128], index: 3, kind: output, shape index: {}]  }
   0x1   :  { %9 = vsyncpa [#allocation7], 0 }
   0x2   :  { %10 = vsyncpa [#allocation5], 0  ;;  %s15_s14 = sshll.u32 %s358_s0, 4  ;;  %s307_s15 = smov [#allocation3]   ;;  %s16_s14 = int_to_ptr.hbm [resolvable:$true] %s15_s14 }
   0x3   :  { %s17_s16 = sshll.u32 %s307_s15, 4  ;;  %s28_s19 = sshll.u32 %s359_s1, 4  ;;  %s18_s16 = int_to_ptr.vmem [resolvable:$true] %s17_s16  ;;  %s29_s19 = int_to_ptr.hbm [resolvable:$true] %s28_s19 }
   0x4   :  { %s308_s20 = smov 128   ;;  %s309_s21 = smov 8  }
   0x5   :  { %23 = dma.hbm_to_vmem [thread:$0]  %s16_s14, 256, %s18_s16, [#allocation4], %s308_s20, %s308_s20, %s309_s21  }
   0x6   :  { %s310_s22 = smov [#allocation6]  }
   0x7   :  { %s30_s23 = sshll.u32 %s310_s22, 4  ;;  %s31_s23 = int_to_ptr.vmem [resolvable:$true] %s30_s23 }
   0x8   :  { %36 = dma.hbm_to_vmem [thread:$0]  %s29_s19, 512, %s31_s23, [#allocation7], %s308_s20, %s308_s20, %s309_s21  }
   0x9   :  { %301 = dma.done.wait [#allocation4], 256  }
   0xa   :  { %302 = vsyncadd [#allocation4], 4294967040 }
   0xb   :  { %303 = dma.done.wait [#allocation7], 512  }
   0xc   :  { %304 = vsyncadd [#allocation7], 4294966784  ;;  %v60_v0 = vld [vmem:[#allocation6 + $0x18] sm:$0xff]  ;;  %v59_v1 = vld [vmem:[#allocation6 + $0x10] sm:$0xff]  ;;  %vm61_vm0 = vcmask 261120   ;;  %v116_v13 = vlaneseq  ;;  %s195_s27 = sshll.u32 %s361_s3, 4  ;;  %s196_s27 = int_to_ptr.hbm [resolvable:$true] %s195_s27 }
   0xd   :  { %80 = vmatpush.msra.mxu0 %v60_v0  ;;  %211 = vmatpush.msra.mxu1 %v60_v0  ;;  %v58_v2 = vld [vmem:[#allocation6 + $0x8] sm:$0xff]  ;;  %v57_v3 = vld [vmem:[#allocation6] sm:$0xff]  ;;  %v55_v4 = vld [vmem:[#allocation3] sm:$0xff] }
   0xe   :  { %v56_v5 = vld [vmem:[#allocation3 + $0x8] sm:$0xff]  ;;  %v220_v6 = vld [vmem:[%s360_s2] ss:$0 sm:$0xff]  ;;  %v117_v14 = vand.u32 127, %v116_v13  ;;  %s311_s2 = smov [#allocation8]  }
   0xf   :  { %81 = vmatpush.msra.mxu0 %v59_v1  ;;  %212 = vmatpush.msra.mxu1 %v59_v1  ;;  %s193_s24 = sshll.u32 %s311_s2, 4  ;;  %s194_s24 = int_to_ptr.vmem [resolvable:$true] %s193_s24 }
  0x10   :  { %vm118_vm1 = vcmp.lt.s32.totalorder %v117_v14, 64 }
  0x11   :  { %82 = vmatpush.msra.mxu0 %v58_v2  ;;  %213 = vmatpush.msra.mxu1 %v58_v2 }
  0x13   :  { %83 = vmatpush.msra.mxu0 %v57_v3  ;;  %214 = vmatpush.msra.mxu1 %v57_v3 }
  0x14   :  { %209 = vmatmul.msk.f32.vlgmr.msra.gmra.mxu0 %vm61_vm0, %v55_v4  ;;  %210 = vmatmul.msk.f32.vlgmr.msra.gmra.mxu1 %vm61_vm0, %v56_v5 }
  0x91   :  { %v85_v7 = vpop.f32.mrf.mxu0  ;;  %v88_v9 = vpop.f32.mrf.mxu1 }
  0x92   :  { %v104_v8 = vadd.f32 %v220_v6, %v85_v7  ;;  %v105_v11 = vadd.f32 %v220_v6, %v88_v9 }
  0x94   :  { %v106_v10 = vmax.f32 %v104_v8, 0.0  ;;  %v107_v12 = vmax.f32 %v105_v11, 0.0 }
  0x96   :  { %108 = vadd.xlane.f32.xlu0 %v106_v10 }
  0x9e   :  { %110 = vadd.xlane.f32.xlu0 %v107_v12 }
 0x109   :  { %v109_v15 = vpop.xlane.xlu0 %108 }
 0x10a   :  { %v112_v16 = vmul.f32 0.015625, %v109_v15 }
 0x10c   :  { %v114_v17 = vsub.f32 %v106_v10, %v112_v16 }
 0x10e   :  { %v119_v18 = vsel %vm118_vm1, %v114_v17, 0.0 }
 0x10f   :  { %v121_v19 = vmul.f32 %v119_v18, %v119_v18 }
 0x111   :  { %123 = vadd.xlane.f32.xlu1 %v121_v19  ;;  %v111_v20 = vpop.xlane.xlu0 %110 }
 0x112   :  { %v113_v21 = vmul.f32 0.015625, %v111_v20 }
 0x114   :  { %v115_v22 = vsub.f32 %v107_v12, %v113_v21 }
 0x116   :  { %v347_v23 = vsel %vm118_vm1, %v115_v22, 0.0 }
 0x117   :  { %v122_v24 = vmul.f32 %v347_v23, %v347_v23 }
 0x119   :  { %125 = vadd.xlane.f32.xlu1 %v122_v24 }
 0x184   :  { %v124_v25 = vpop.xlane.xlu1 %123 }
 0x185   :  { %v127_v26 = vmul.f32 0.015625, %v124_v25 }
 0x187   :  { %221 = vrsqrt.f32 %v127_v26  ;;  %vm136_vm2 = vcmp.eq.f32.partialorder %v127_v26, inf  ;;  %v139_v39 = vand.u32 2147483648, %v127_v26  ;;  %vm138_vm3 = vcmp.eq.f32.partialorder %v127_v26, 0.0 }
 0x18c   :  { %v126_v27 = vpop.xlane.xlu1 %125 }
 0x18d   :  { %v222_v28 = vpop.eup %221  ;;  %v128_v29 = vmul.f32 0.015625, %v126_v27 }
 0x18e   :  { %v130_v30 = vmul.f32 %v222_v28, %v127_v26 }
 0x18f   :  { %223 = vrsqrt.f32 %v128_v29  ;;  %vm148_vm4 = vcmp.eq.f32.partialorder %v128_v29, inf  ;;  %v151_v47 = vand.u32 2147483648, %v128_v29  ;;  %vm150_vm5 = vcmp.eq.f32.partialorder %v128_v29, 0.0 }
 0x190   :  { %v131_v31 = vmul.f32 %v222_v28, %v130_v30 }
 0x192   :  { %v132_v32 = vmul.f32 0.5, %v131_v31 }
 0x194   :  { %v133_v33 = vsub.f32 1.5, %v132_v32 }
 0x195   :  { %v224_v34 = vpop.eup %223 }
 0x196   :  { %v134_v35 = vmul.f32 %v222_v28, %v133_v33  ;;  %v142_v36 = vmul.f32 %v224_v34, %v128_v29 }
 0x198   :  { %v135_v37 = vmul.f32 %v134_v35, %v127_v26  ;;  %v143_v38 = vmul.f32 %v224_v34, %v142_v36 }
 0x19a   :  { %v137_v40 = vsel %vm136_vm2, %v127_v26, %v135_v37  ;;  %v144_v41 = vmul.f32 0.5, %v143_v38 }
 0x19b   :  { %v140_v42 = vsel %vm138_vm3, %v139_v39, %v137_v40 }
 0x19c   :  { %v145_v43 = vsub.f32 1.5, %v144_v41  ;;  %v153_v44 = vadd.f32 1e-05, %v140_v42 }
 0x19e   :  { %v146_v45 = vmul.f32 %v224_v34, %v145_v43  ;;  %225 = vrcp.f32 %v153_v44  ;;  %v166_v54 = vand.u32 2147483648, %v153_v44  ;;  %v164_v56 = vand.u32 2147483647, %v153_v44 }
 0x19f   :  { %vm160_vm7 = vweird.f32 %v153_v44 }
 0x1a0   :  { %v147_v46 = vmul.f32 %v146_v45, %v128_v29  ;;  %v167_v59 = vor.u32 1.1754944e-38, %v166_v54  ;;  %vm165_vm9 = vcmp.eq.f32.partialorder %v164_v56, 8.507059e+37 }
 0x1a2   :  { %v149_v48 = vsel %vm148_vm4, %v128_v29, %v147_v46 }
 0x1a3   :  { %v152_v49 = vsel %vm150_vm5, %v151_v47, %v149_v48 }
 0x1a4   :  { %v226_v50 = vpop.eup %225  ;;  %v154_v51 = vadd.f32 1e-05, %v152_v49 }
 0x1a5   :  { %v156_v52 = vmul.f32 %v226_v50, %v153_v44  ;;  %vm161_vm6 = vweird.f32 %v226_v50 }
 0x1a6   :  { %227 = vrcp.f32 %v154_v51  ;;  %vm162_vm8 = vmor %vm160_vm7, %vm161_vm6  ;;  %v181_v1 = vand.u32 2147483648, %v154_v51  ;;  %v179_v3 = vand.u32 2147483647, %v154_v51  ;;  %vm175_vm11 = vweird.f32 %v154_v51 }
 0x1a7   :  { %v157_v53 = vsub.f32 1.0, %v156_v52 }
 0x1a8   :  { %v182_v5 = vor.u32 1.1754944e-38, %v181_v1  ;;  %vm180_vm13 = vcmp.eq.f32.partialorder %v179_v3, 8.507059e+37 }
 0x1a9   :  { %v158_v55 = vmul.f32 %v226_v50, %v157_v53 }
 0x1ab   :  { %v159_v57 = vadd.f32 %v226_v50, %v158_v55 }
 0x1ac   :  { %v228_v58 = vpop.eup %227 }
 0x1ad   :  { %v163_v60 = vsel %vm162_vm8, %v226_v50, %v159_v57  ;;  %v171_v61 = vmul.f32 %v228_v58, %v154_v51  ;;  %vm176_vm10 = vweird.f32 %v228_v58 }
 0x1ae   :  { %v168_v62 = vsel %vm165_vm9, %v167_v59, %v163_v60  ;;  %vm177_vm12 = vmor %vm175_vm11, %vm176_vm10 }
 0x1af   :  { %v172_v63 = vsub.f32 1.0, %v171_v61  ;;  %v185_v0 = vmul.f32 %v168_v62, %v119_v18 }
 0x1b1   :  { %v173_v2 = vmul.f32 %v228_v58, %v172_v63  ;;  %187 = vst [vmem:[#allocation8] sm:$0xff] %v185_v0 }
 0x1b3   :  { %v174_v4 = vadd.f32 %v228_v58, %v173_v2 }
 0x1b5   :  { %v178_v6 = vsel %vm177_vm12, %v228_v58, %v174_v4 }
 0x1b6   :  { %v183_v7 = vsel %vm180_vm13, %v182_v5, %v178_v6 }
 0x1b7   :  { %v186_v8 = vmul.f32 %v183_v7, %v347_v23 }
 0x1b9   :  { %188 = vst [vmem:[#allocation8 + $0x8] sm:$0xff] %v186_v8 }
 0x1ba   :  { %201 = dma.vmem_to_hbm [thread:$0]  %s194_s24, 256, %s196_s27, [#allocation5], %s308_s20, %s308_s20, %s309_s21  }
 0x1bb   :  { %305 = dma.done.wait [#allocation5], 256  }
 0x1bc   :  { %306 = vsyncadd [#allocation5], 4294967040 }
 0x1bd   :  { %206 = vsyncpa [#allocation4], 1 }
 0x1be   :  { %207 = vsyncpa [#allocation7], 1 }
 0x1bf   :  { %208 = vsyncpa [#allocation5], 1 }

</bundles_post_ra>
